<compile_context>
chip_gen: v5e
topology: v5e:2x2
jax: 0.10.0
libtpu: 0.0.40
codegen_flags: <defaults>
</compile_context>

<pallas_src>
import functools

import jax
import jax.numpy as jnp
from jax.experimental import pallas as pl
from jax.experimental.pallas import tpu as pltpu


def se_kernel(x_ref, w1_ref, w2_ref, o_ref, *, inv_hw):
    # x_ref / o_ref: (Bt, HW, C)   channels on the lane axis
    # w1_ref: (C, Cr), w2_ref: (Cr, C)
    x = x_ref[...]
    xf = x.astype(jnp.float32)                        # f32 accumulation path

    # Squeeze: global average pool over the spatial (sublane) axis.
    y = jnp.sum(xf, axis=1) * inv_hw                  # (Bt, C)

    # Excitation MLP: fc1 -> ReLU -> fc2 -> Sigmoid (all f32 on the MXU).
    h = jnp.dot(y, w1_ref[...].astype(jnp.float32),
                preferred_element_type=jnp.float32)   # (Bt, Cr)
    h = jnp.maximum(h, 0.0)
    s = jnp.dot(h, w2_ref[...].astype(jnp.float32),
                preferred_element_type=jnp.float32)   # (Bt, C)
    s = jax.nn.sigmoid(s)

    # Scale: broadcast s across the spatial axis (stride-0 sublane broadcast).
    o_ref[...] = (xf * s[:, None, :]).astype(o_ref.dtype)


def _pick_bt(B, bytes_per_batch, block_budget_bytes):
    """Largest divisor of B whose double-buffered in+out block fits the budget,
    preferring choices that keep >= 2 grid steps (v7x has 2 TensorCores)."""
    bt_max = max(1, block_budget_bytes // (4 * max(1, bytes_per_batch)))
    divisors = [d for d in range(1, B + 1) if B % d == 0 and d <= bt_max]
    if not divisors:
        return 1
    multi_step = [d for d in divisors if B // d >= 2]
    return max(multi_step) if multi_step else max(divisors)


def se_layer(x, w1, w2, *, block_budget_bytes=8 * 1024 * 1024):
    """Squeeze-and-Excitation forward.

    x : (B, C, H, W)  float32 or bfloat16
    w1: (C, C//r)     fc1 weight, (in, out) layout (transposed nn.Linear weight)
    w2: (C//r, C)     fc2 weight, (in, out) layout
    """
    B, C, H, W = x.shape
    HW = H * W
    Cr = w1.shape[1]

    # Channels-last layout so channels land on the lane axis inside the kernel.
    x_cl = jnp.transpose(x, (0, 2, 3, 1)).reshape(B, HW, C)

    bytes_per_batch = HW * C * jnp.dtype(x.dtype).itemsize
    bt = _pick_bt(B, bytes_per_batch, block_budget_bytes)
    grid_b = B // bt

    kernel = functools.partial(se_kernel, inv_hw=1.0 / float(HW))

    out_cl = pl.pallas_call(
        kernel,
        out_shape=jax.ShapeDtypeStruct((B, HW, C), x.dtype),
        grid_spec=pltpu.PrefetchScalarGridSpec(
            num_scalar_prefetch=0,
            grid=(grid_b,),
            in_specs=[
                pl.BlockSpec((bt, HW, C), lambda b: (b, 0, 0)),
                pl.BlockSpec((C, Cr), lambda b: (0, 0)),
                pl.BlockSpec((Cr, C), lambda b: (0, 0)),
            ],
            out_specs=pl.BlockSpec((bt, HW, C), lambda b: (b, 0, 0)),
        ),
        compiler_params=pltpu.CompilerParams(
            dimension_semantics=("parallel",),
            vmem_limit_bytes=48 * 1024 * 1024,
        ),
    )(x_cl, w1, w2)

    return jnp.transpose(out_cl.reshape(B, H, W, C), (0, 3, 1, 2))


def se_layer_ref(x, w1, w2):
    """Pure-JAX reference matching the PyTorch forward (f32)."""
    y = jnp.mean(x.astype(jnp.float32), axis=(2, 3))         # (B, C)
    y = jnp.maximum(y @ w1.astype(jnp.float32), 0.0)          # (B, Cr)
    y = jax.nn.sigmoid(y @ w2.astype(jnp.float32))            # (B, C)
    return x.astype(jnp.float32) * y[:, :, None, None]


if __name__ == "__main__":
    # Small shapes consistent with the module: channel // reduction >= 1,
    # so channels=32, reduction=16 -> hidden=2.
    B, C, H, W = 2, 32, 8, 8
    reduction = 16
    Cr = C // reduction

    key = jax.random.PRNGKey(0)
    kx, k1, k2 = jax.random.split(key, 3)

    x = jax.random.normal(kx, (B, C, H, W), dtype=jnp.float32)
    # PyTorch nn.Linear stores weight as (out, in); pass the transposed
    # (in, out) form so the kernel computes y @ W directly.
    w1 = jax.random.normal(k1, (C, Cr), dtype=jnp.float32) * (1.0 / jnp.sqrt(C))
    w2 = jax.random.normal(k2, (Cr, C), dtype=jnp.float32) * (1.0 / jnp.sqrt(Cr))

    # f32 path: must match the reference tightly (module semantics).
    out = jax.block_until_ready(se_layer(x, w1, w2))
    ref = jax.block_until_ready(se_layer_ref(x, w1, w2))
    assert out.shape == (B, C, H, W)
    assert out.dtype == x.dtype
    assert jnp.allclose(out, ref, atol=1e-5, rtol=1e-5)

    # bf16 carry path (half HBM traffic): accumulation stays f32 inside the
    # kernel; compare to the f32 reference with bf16-level tolerance.
    x_bf16 = x.astype(jnp.bfloat16)
    out_bf16 = jax.block_until_ready(se_layer(x_bf16, w1, w2))
    assert out_bf16.dtype == jnp.bfloat16
    assert jnp.allclose(out_bf16.astype(jnp.float32), ref, atol=6e-2, rtol=6e-2)

    print("KERNEL_OK")
</pallas_src>

<mosaic_0001>
module attributes {stable_mosaic.version = 11 : i64} {
  func.func @se_kernel(%arg0: i32, %arg1: memref<1x64x32xf32, #tpu.memory_space<vmem>>, %arg2: memref<32x2xf32, #tpu.memory_space<vmem>>, %arg3: memref<2x32xf32, #tpu.memory_space<vmem>>, %arg4: memref<1x64x32xf32, #tpu.memory_space<vmem>>) attributes {dimension_semantics = [#tpu.dimension_semantics<parallel>], iteration_bounds = array<i64: 2>, scalar_prefetch = 0 : i64, scratch_operands = 0 : i64, tpu.core_type = #tpu.core_type<tc>, window_params = [{transform_indices = @transform_0, window_bounds = array<i64: 1, 64, 32>}, {pipeline_mode = #tpu.pipeline_mode<synchronous>, transform_indices = @transform_1, window_bounds = array<i64: 32, 2>}, {pipeline_mode = #tpu.pipeline_mode<synchronous>, transform_indices = @transform_2, window_bounds = array<i64: 2, 32>}, {transform_indices = @transform_3, window_bounds = array<i64: 1, 64, 32>}]} {
    %c0 = arith.constant 0 : index
    %c0_0 = arith.constant 0 : index
    %c0_1 = arith.constant 0 : index
    %0 = vector.load %arg1[%c0, %c0_0, %c0_1] : memref<1x64x32xf32, #tpu.memory_space<vmem>>, vector<1x64x32xf32>
    %cst = arith.constant dense<0.000000e+00> : vector<1x32xf32>
    %1 = vector.multi_reduction <add>, %0, %cst [1] : vector<1x64x32xf32> to vector<1x32xf32>
    %cst_2 = arith.constant 1.562500e-02 : f32
    %2 = vector.broadcast %cst_2 : f32 to vector<1x32xf32>
    %3 = arith.mulf %1, %2 : vector<1x32xf32>
    %c0_3 = arith.constant 0 : index
    %c0_4 = arith.constant 0 : index
    %4 = vector.load %arg2[%c0_3, %c0_4] : memref<32x2xf32, #tpu.memory_space<vmem>>, vector<32x2xf32>
    %cst_5 = arith.constant dense<0.000000e+00> : vector<1x2xf32>
    %5 = tpu.matmul %3, %4, %cst_5 {dimension_numbers = #tpu.dot_dimension_numbers<[1], [0], [0], [1], [0, 0, 1, 1], [], []>} : vector<1x32xf32>, vector<32x2xf32>, vector<1x2xf32> -> vector<1x2xf32>
    %cst_6 = arith.constant 0.000000e+00 : f32
    %6 = vector.broadcast %cst_6 : f32 to vector<1x2xf32>
    %7 = arith.maximumf %5, %6 : vector<1x2xf32>
    %c0_7 = arith.constant 0 : index
    %c0_8 = arith.constant 0 : index
    %8 = vector.load %arg3[%c0_7, %c0_8] : memref<2x32xf32, #tpu.memory_space<vmem>>, vector<2x32xf32>
    %cst_9 = arith.constant dense<0.000000e+00> : vector<1x32xf32>
    %9 = tpu.matmul %7, %8, %cst_9 {dimension_numbers = #tpu.dot_dimension_numbers<[1], [0], [0], [1], [0, 0, 1, 1], [], []>} : vector<1x2xf32>, vector<2x32xf32>, vector<1x32xf32> -> vector<1x32xf32>
    %10 = arith.negf %9 : vector<1x32xf32>
    %11 = math.exp %10 : vector<1x32xf32>
    %cst_10 = arith.constant 1.000000e+00 : f32
    %12 = vector.broadcast %cst_10 : f32 to vector<1x32xf32>
    %13 = arith.addf %12, %11 : vector<1x32xf32>
    %14 = arith.divf %12, %13 : vector<1x32xf32>
    %15 = vector.shape_cast %14 : vector<1x32xf32> to vector<1x1x32xf32>
    %16 = vector.broadcast %15 : vector<1x1x32xf32> to vector<1x64x32xf32>
    %17 = arith.mulf %0, %16 : vector<1x64x32xf32>
    %c0_11 = arith.constant 0 : index
    %c0_12 = arith.constant 0 : index
    %c0_13 = arith.constant 0 : index
    %18 = vector.load %arg4[%c0_11, %c0_12, %c0_13] : memref<1x64x32xf32, #tpu.memory_space<vmem>>, vector<1x64x32xf32>
    tpu.vector_store %arg4[%c0_11, %c0_12, %c0_13], %17 {strides = array<i32>} : memref<1x64x32xf32, #tpu.memory_space<vmem>>, vector<1x64x32xf32>,
    return
  }
  func.func @transform_0(%arg0: i32) -> (i32, i32, i32) {
    %c0_i32 = arith.constant 0 : i32
    %c0_i32_0 = arith.constant 0 : i32
    %c0_i32_1 = arith.constant 0 : i32
    return %arg0, %c0_i32, %c0_i32_0 : i32, i32, i32
  }
  func.func @transform_1(%arg0: i32) -> (i32, i32) {
    %c0_i32 = arith.constant 0 : i32
    %c0_i32_0 = arith.constant 0 : i32
    %c0_i32_1 = arith.constant 0 : i32
    return %c0_i32, %c0_i32_0 : i32, i32
  }
  func.func @transform_2(%arg0: i32) -> (i32, i32) {
    %c0_i32 = arith.constant 0 : i32
    %c0_i32_0 = arith.constant 0 : i32
    %c0_i32_1 = arith.constant 0 : i32
    return %c0_i32, %c0_i32_0 : i32, i32
  }
  func.func @transform_3(%arg0: i32) -> (i32, i32, i32) {
    %c0_i32 = arith.constant 0 : i32
    %c0_i32_0 = arith.constant 0 : i32
    %c0_i32_1 = arith.constant 0 : i32
    return %arg0, %c0_i32, %c0_i32_0 : i32, i32, i32
  }
}

</mosaic_0001>

<bundles_post_ra>
// kernel: tpu_custom_call.1
= control target key start
LH: loop header
LB: loop body
LE: loop exit
PB: predicated region body
PF: predicated region fallthrough
CT: control target
= control target key end

     0   :  { %s407_s12 = smov 0   ;;  %s463_s0 = inlined_call_operand.vmem [shape: f32[2,64,32], index: 0, kind: input, shape index: {}]   ;;  %s464_s1 = inlined_call_operand.vmem [shape: f32[32,2], index: 1, kind: input, shape index: {}]   ;;  %s465_s2 = inlined_call_operand.vmem [shape: f32[2,32], index: 2, kind: input, shape index: {}]   ;;  %s466_s3 = inlined_call_operand.vmem [shape: f32[2,64,32], index: 3, kind: output, shape index: {}]  }
   0x1 LB: > { %s350_s13 = sadd.s32 4294967295, %s385_s12   ;;  %p354_p0 = scmp.ge.s32.totalorder %s385_s12, 1  ;;  %s385_s12 = sphi %s407_s12, %s13_s12  }
   0x2   : > { %p137_p1 = scmp.lt.s32.totalorder %s385_s12, 3 }
   0x4   : > { %p138_p2 = pnand %p354_p0, %p137_p1 }
   0x5   : > { %p161_p3 = scmp.lt.s32.totalorder (!%p138_p2), %s350_s13, 1 }
   0x6   : > { %141 = sbr.rel (%p138_p2) target bundleno = 338 (0x152), region = 32 }
   0xb   : > { %v205_v0 = vld [vmem:[%s464_s1 + $0x18] sm:$0xff]  ;;  %v204_v1 = vld [vmem:[%s464_s1 + $0x10] sm:$0xff]  ;;  %v203_v2 = vld [vmem:[%s464_s1 + $0x8] sm:$0xff]  ;;  %s468_s13 = smov (!%p161_p3, %s350_s13), 1  ;;  %vm179_vm0 = vcmask 261120   ;;  %vm235_vm1 = vcmask 1041408  }
   0xc   : > { %221 = vmatpush.msra.mxu0 %v205_v0  ;;  %v202_v3 = vld [vmem:[%s464_s1] sm:$0xff]  ;;  %s365_s22 = sshll.u32 %s468_s13, 6  ;;  %vm231_vm2 = vcmask 15360  }
   0xd   : > { %s165_s25 = scalar_lea.vmem %s463_s0, %s365_s22  ;;  %v230_v34 = vld [vmem:[%s465_s2] sm:$0x3]  ;;  %s170_s30 = scalar_lea.vmem %s466_s3, %s365_s22 }
   0xe   : > { %222 = vmatpush.msra.mxu0 %v204_v1  ;;  %v171_v4 = vld [vmem:[%s165_s25] sm:$0xff]  ;;  %v172_v5 = vld [vmem:[%s165_s25 + $0x8] sm:$0xff]  ;;  %v173_v6 = vld [vmem:[%s165_s25 + $0x10] sm:$0xff]  ;;  %360 = vmatpush.msk.msra.mxu1 %vm235_vm1, %v230_v34 }
   0xf   : > { %v174_v7 = vld [vmem:[%s165_s25 + $0x18] sm:$0xff]  ;;  %v180_v8 = vsel %vm179_vm0, %v171_v4, 0.0  ;;  %v181_v9 = vsel %vm179_vm0, %v172_v5, 0.0  ;;  %v183_v10 = vsel %vm179_vm0, %v173_v6, 0.0  ;;  %v175_v11 = vld [vmem:[%s165_s25 + $0x20] sm:$0xff]  ;;  %v176_v14 = vld [vmem:[%s165_s25 + $0x28] sm:$0xff] }
  0x10   : > { %223 = vmatpush.msra.mxu0 %v203_v2  ;;  %v182_v12 = vadd.f32 %v181_v9, %v180_v8  ;;  %v185_v13 = vsel %vm179_vm0, %v174_v7, 0.0  ;;  %v187_v16 = vsel %vm179_vm0, %v175_v11, 0.0  ;;  %v177_v17 = vld [vmem:[%s165_s25 + $0x30] sm:$0xff]  ;;  %v189_v19 = vsel %vm179_vm0, %v176_v14, 0.0  ;;  %v178_v20 = vld [vmem:[%s165_s25 + $0x38] sm:$0xff] }
  0x11   : > { %v191_v22 = vsel %vm179_vm0, %v177_v17, 0.0  ;;  %v193_v24 = vsel %vm179_vm0, %v178_v20, 0.0 }
  0x12   : > { %224 = vmatpush.msra.mxu0 %v202_v3  ;;  %v184_v15 = vadd.f32 %v183_v10, %v182_v12 }
  0x14   : > { %v186_v18 = vadd.f32 %v185_v13, %v184_v15 }
  0x16   : > { %v188_v21 = vadd.f32 %v187_v16, %v186_v18 }
  0x18   : > { %v190_v23 = vadd.f32 %v189_v19, %v188_v21 }
  0x1a   : > { %v192_v25 = vadd.f32 %v191_v22, %v190_v23 }
  0x1c   : > { %v194_v26 = vadd.f32 %v193_v24, %v192_v25 }
  0x1e   : > { %v195_v27 = vrot.slane %v194_v26, 4 }
  0x20   : > { %v196_v28 = vadd.f32 %v195_v27, %v194_v26 }
  0x22   : > { %v197_v29 = vrot.slane %v196_v28, 2 }
  0x24   : > { %v198_v30 = vadd.f32 %v197_v29, %v196_v28 }
  0x26   : > { %v199_v31 = vrot.slane %v198_v30, 1 }
  0x28   : > { %v200_v32 = vadd.f32 %v199_v31, %v198_v30 }
  0x2a   : > { %v201_v33 = vmul.f32 0.015625, %v200_v32 }
  0x2c   : > { %359 = vmatmul.msk.f32.vlgmr.msra.gmra.mxu0 %vm179_vm0, %v201_v33 }
  0xa9   : > { %v226_v35 = vpop.f32.mrf.mxu0 }
  0xaa   : > { %v229_v36 = vmax.f32 %v226_v35, 0.0 }
  0xac   : > { %361 = vmatmul.msk.f32.vlgmr.msra.gmra.mxu1 %vm231_vm2, %v229_v36 }
 0x129   : > { %v256_v37 = vpop.f32.mrf.mxu1 }
 0x12a   : > { %v362_v38 = vmul.f32 -1.442695, %v256_v37 }
 0x12c   : > { %375 = vpow2.f32 %v362_v38 }
 0x132   : > { %v376_v39 = vpop.eup %375 }
 0x133   : > { %v262_v40 = vadd.f32 1.0, %v376_v39 }
 0x135   : > { %377 = vrcp.f32 %v262_v40  ;;  %v274_v44 = vand.u32 2147483648, %v262_v40  ;;  %v272_v46 = vand.u32 2147483647, %v262_v40  ;;  %vm268_vm4 = vweird.f32 %v262_v40 }
 0x137   : > { %v275_v48 = vor.u32 1.1754944e-38, %v274_v44  ;;  %vm273_vm6 = vcmp.eq.f32.partialorder %v272_v46, 8.507059e+37 }
 0x13b   : > { %v378_v41 = vpop.eup %377 }
 0x13c   : > { %v264_v42 = vmul.f32 %v378_v41, %v262_v40  ;;  %vm269_vm3 = vweird.f32 %v378_v41 }
 0x13d   : > { %vm270_vm5 = vmor %vm268_vm4, %vm269_vm3 }
 0x13e   : > { %v265_v43 = vsub.f32 1.0, %v264_v42 }
 0x140   : > { %v266_v45 = vmul.f32 %v378_v41, %v265_v43 }
 0x142   : > { %v267_v47 = vadd.f32 %v378_v41, %v266_v45 }
 0x144   : > { %v271_v49 = vsel %vm270_vm5, %v378_v41, %v267_v47 }
 0x145   : > { %v276_v50 = vsel %vm273_vm6, %v275_v48, %v271_v49 }
 0x146   : > { %v278_v51 = vperm.slane %v276_v50, 0 }
 0x148   : > { %v279_v52 = vmul.f32 %v278_v51, %v171_v4  ;;  %v280_v53 = vmul.f32 %v278_v51, %v172_v5  ;;  %v281_v54 = vmul.f32 %v278_v51, %v173_v6  ;;  %v282_v55 = vmul.f32 %v278_v51, %v174_v7 }
 0x149   : > { %v283_v56 = vmul.f32 %v278_v51, %v175_v11  ;;  %v284_v57 = vmul.f32 %v278_v51, %v176_v14  ;;  %v285_v58 = vmul.f32 %v278_v51, %v177_v17  ;;  %v286_v59 = vmul.f32 %v278_v51, %v178_v20 }
 0x14a   : > { %287 = vst.msk [vmem:[%s170_s30] sm:$0xff] %vm179_vm0, %v279_v52 }
 0x14b   : > { %288 = vst.msk [vmem:[%s170_s30 + $0x8] sm:$0xff] %vm179_vm0, %v280_v53 }
 0x14c   : > { %289 = vst.msk [vmem:[%s170_s30 + $0x10] sm:$0xff] %vm179_vm0, %v281_v54 }
 0x14d   : > { %290 = vst.msk [vmem:[%s170_s30 + $0x18] sm:$0xff] %vm179_vm0, %v282_v55 }
 0x14e   : > { %291 = vst.msk [vmem:[%s170_s30 + $0x20] sm:$0xff] %vm179_vm0, %v283_v56 }
 0x14f   : > { %292 = vst.msk [vmem:[%s170_s30 + $0x28] sm:$0xff] %vm179_vm0, %v284_v57 }
 0x150   : > { %293 = vst.msk [vmem:[%s170_s30 + $0x30] sm:$0xff] %vm179_vm0, %v285_v58 }
 0x151   : > { %294 = vst.msk [vmem:[%s170_s30 + $0x38] sm:$0xff] %vm179_vm0, %v286_v59 }
 0x152 PF: > { %s13_s12 = sadd.s32 1, %s385_s12  }
 0x153   : > { %p10_p4 = scmp.ge.s32.totalorder %s13_s12, 4  }
 0x155   :  { %12 = sbr.rel (!%p10_p4) target bundleno = 1 (0x1), region = 62 }

</bundles_post_ra>
